<compile_context>
chip_gen: v5e
topology: v5e:2x2
jax: 0.10.0
libtpu: 0.0.40
codegen_flags: <defaults>
</compile_context>

<pallas_src>
import math

import numpy as np
import jax
import jax.numpy as jnp
from jax.experimental import pallas as pl
from jax.experimental.pallas import tpu as pltpu

KERNEL_SIZE = 5
IN_CHANNELS = 6
OUT_CHANNELS = 16
NUM_MAPS = 10                                   # raw parameter tensor is (10, 6, 5, 5)
NUM_TAPS = KERNEL_SIZE * KERNEL_SIZE            # 25
TAP_STRIDE = 8                                  # sublane-aligned rows per tap group
K_PAD = NUM_TAPS * TAP_STRIDE                   # 200 : tile-exact contraction dim

CONNECTION_LIST = [
    [0, 4, 5, 6, 9, 10, 11, 12, 14, 15],
    [0, 1, 5, 6, 7, 10, 11, 12, 13, 15],
    [0, 1, 2, 6, 7, 8, 11, 13, 14, 15],
    [1, 2, 3, 6, 7, 8, 9, 12, 14, 15],
    [2, 3, 4, 7, 8, 9, 10, 12, 13, 15],
    [3, 4, 5, 8, 9, 10, 11, 13, 14, 15],
]

# Static (numpy, trace-time) gather map and contribution counts.
#   _IDX_MAP[c, i] = j  such that CONNECTION_LIST[i][j] == c, else NUM_MAPS (zero row)
_IDX_MAP = np.full((OUT_CHANNELS, IN_CHANNELS), NUM_MAPS, dtype=np.int32)
_COUNT = np.zeros((OUT_CHANNELS,), dtype=np.float32)
for _i, _outs in enumerate(CONNECTION_LIST):
    for _j, _c in enumerate(_outs):
        _IDX_MAP[_c, _i] = _j
        _COUNT[_c] += 1.0
_CIN_IDX = np.arange(IN_CHANNELS, dtype=np.int32)[None, :]   # (1, 6)


def _dense_weight_and_bias(weight, bias):
    """Scatter the sparse (10,6) weight bank -> dense (16,6,5,5) via one gather,
    and fold the repeated bias additions into one per-channel bias."""
    weight = weight.astype(jnp.float32)
    weight_padded = jnp.concatenate(
        [weight, jnp.zeros((1, IN_CHANNELS, KERNEL_SIZE, KERNEL_SIZE), jnp.float32)],
        axis=0)                                              # (11, 6, 5, 5), row 10 = zeros
    w_full = weight_padded[_IDX_MAP, _CIN_IDX]               # (16, 6, 5, 5), single gather
    bias_full = bias[0, :, 0, 0].astype(jnp.float32) * jnp.asarray(_COUNT)   # (16,)
    return w_full, bias_full


def _pack_weight(w_full):
    """(16, 6, 5, 5) -> (16, K_PAD) with k = (kh*5 + kw)*8 + cin.
    Columns 6,7 of each tap group are zero (they multiply the zero padding
    rows of the in-kernel patch slab)."""
    w_t = jnp.transpose(w_full, (0, 2, 3, 1))                     # (16, 5, 5, 6)
    w_t = w_t.reshape(OUT_CHANNELS, NUM_TAPS, IN_CHANNELS)        # (16, 25, 6)
    w_t = jnp.pad(w_t, ((0, 0), (0, 0), (0, TAP_STRIDE - IN_CHANNELS)))
    return w_t.reshape(OUT_CHANNELS, K_PAD)                       # (16, 200)


def _make_kernel(W, OH, OW):
    """Build the per-batch kernel for a given image width / output size."""
    # Widest (exclusive) column index any valid output position needs.
    valid = (OH - 1) * W + OW

    def kernel(w_ref, x_ref, b_ref, o_ref, p_ref):
        # w_ref: (16, K_PAD)   x_ref: (1, Cin, HW_pad)   b_ref: (16, 1)
        # o_ref: (1, 16, HW_pad)   p_ref (scratch): (K_PAD, HW_pad)
        #
        # In-kernel im2col: row k = (kh*KW + kw)*8 + cin of the patch slab holds
        # x[cin, n + kh*W + kw] where n is the lane-dense flattened spatial
        # index (row stride W).  Columns with ow >= OW / oh >= OH carry
        # don't-care values that only pollute output columns the wrapper
        # slices away; padding rows / tail columns are zeroed so the matmul
        # never touches uninitialized VMEM.
        p_ref[...] = jnp.zeros_like(p_ref)
        x = x_ref[0]                                   # (Cin, HW_pad)
        for kh in range(KERNEL_SIZE):
            for kw in range(KERNEL_SIZE):
                t = kh * KERNEL_SIZE + kw
                s = kh * W + kw                        # static shift of this tap
                p_ref[t * TAP_STRIDE:t * TAP_STRIDE + IN_CHANNELS, 0:valid] = (
                    x[:, s:s + valid])
        # One lane-dense MXU matmul + per-channel bias (lane broadcast).
        acc = jnp.dot(w_ref[...], p_ref[...],
                      preferred_element_type=jnp.float32)          # (16, HW_pad)
        o_ref[0] = (acc + b_ref[...]).astype(o_ref.dtype)

    return kernel


@jax.jit
def layer_c3_forward(x_nchw, weight, bias):
    """x_nchw: (B, 6, H, W) f32; weight: (10, 6, 5, 5); bias: (1, 16, 1, 1)."""
    B, Cin, H, W = x_nchw.shape
    assert Cin == IN_CHANNELS
    OH = H - KERNEL_SIZE + 1
    OW = W - KERNEL_SIZE + 1
    HW = H * W
    # Lane-dense spatial axis rounded to a full MXU pass (256 on v6e/v7x; still
    # a multiple of 128 for v5e).  16x16 inputs are exactly 256 -> no pad copy.
    HW_pad = pl.cdiv(HW, 256) * 256

    w_full, bias_full = _dense_weight_and_bias(weight, bias)
    w_slab = _pack_weight(w_full)                         # (16, K_PAD)
    b_col = bias_full.reshape(OUT_CHANNELS, 1)            # (16, 1)

    # Free (bitcast) reshape to the lane-dense input slab the kernel consumes.
    x_slab = x_nchw.astype(jnp.float32).reshape(B, IN_CHANNELS, HW)
    if HW_pad != HW:
        x_slab = jnp.pad(x_slab, ((0, 0), (0, 0), (0, HW_pad - HW)))

    kernel = _make_kernel(W, OH, OW)

    flops = 2 * B * OUT_CHANNELS * K_PAD * HW_pad
    bytes_accessed = 4 * (OUT_CHANNELS * K_PAD + OUT_CHANNELS
                          + B * IN_CHANNELS * HW_pad
                          + B * OUT_CHANNELS * HW_pad)

    out = pl.pallas_call(
        kernel,
        out_shape=jax.ShapeDtypeStruct((B, OUT_CHANNELS, HW_pad), jnp.float32),
        grid=(B,),
        in_specs=[
            pl.BlockSpec((OUT_CHANNELS, K_PAD), lambda b: (0, 0)),        # weights (resident)
            pl.BlockSpec((1, IN_CHANNELS, HW_pad), lambda b: (b, 0, 0)),  # per-batch input slab
            pl.BlockSpec((OUT_CHANNELS, 1), lambda b: (0, 0)),            # folded bias column
        ],
        out_specs=pl.BlockSpec((1, OUT_CHANNELS, HW_pad), lambda b: (b, 0, 0)),
        scratch_shapes=[pltpu.VMEM((K_PAD, HW_pad), jnp.float32)],        # patch slab
        compiler_params=pltpu.CompilerParams(
            dimension_semantics=("parallel",),        # v7x: batch split across both cores
            vmem_limit_bytes=32 * 1024 * 1024,        # safe headroom on v5e/v6e/v7x as B grows
        ),
        cost_estimate=pl.CostEstimate(
            flops=flops, transcendentals=0, bytes_accessed=bytes_accessed),
    )(w_slab, x_slab, b_col)

    # Valid output columns are n = oh*W + ow (row stride W); everything else is
    # don't-care.  Reshape is a bitcast; the slice is one tiny fused copy.
    out = out[:, :, :HW].reshape(B, OUT_CHANNELS, H, W)[:, :, :OH, :OW]
    return out


def _init_params():
    # Deterministic stand-in for nn.init.kaiming_uniform_(weight, a=sqrt(2)):
    # fan_in = 6*5*5 = 150, gain = sqrt(2/(1+a^2)) = sqrt(2/3),
    # bound = gain * sqrt(3 / fan_in).
    key = jax.random.PRNGKey(0)
    fan_in = IN_CHANNELS * KERNEL_SIZE * KERNEL_SIZE
    gain = math.sqrt(2.0 / (1.0 + 2.0))
    bound = gain * math.sqrt(3.0 / fan_in)
    weight = jax.random.uniform(
        key, (NUM_MAPS, IN_CHANNELS, KERNEL_SIZE, KERNEL_SIZE),
        minval=-bound, maxval=bound, dtype=jnp.float32)
    bias = jnp.full((1, OUT_CHANNELS, 1, 1), 0.01, dtype=jnp.float32)
    return weight, bias


if __name__ == "__main__":
    weight, bias = _init_params()

    key = jax.random.PRNGKey(0)
    x = jax.random.normal(jax.random.fold_in(key, 1),
                          (2, IN_CHANNELS, 16, 16), dtype=jnp.float32)

    out = layer_c3_forward(x, weight, bias)
    out = jax.block_until_ready(out)
    assert out.shape == (2, OUT_CHANNELS, 12, 12), out.shape

    # Reference check against XLA's dense conv with the same scattered weights
    # and the same folded per-channel bias.
    w_full, bias_full = _dense_weight_and_bias(weight, bias)
    ref = jax.lax.conv_general_dilated(
        x, w_full, window_strides=(1, 1), padding="VALID",
        dimension_numbers=("NCHW", "OIHW", "NCHW"))
    ref = ref + bias_full.reshape(1, OUT_CHANNELS, 1, 1)
    assert jnp.allclose(out, ref, atol=1e-4, rtol=1e-4), \
        float(jnp.max(jnp.abs(out - ref)))

    print("KERNEL_OK")
</pallas_src>

<mosaic_0001>
module attributes {stable_mosaic.version = 11 : i64} {
  func.func @kernel(%arg0: i32, %arg1: memref<16x200xf32, #tpu.memory_space<vmem>>, %arg2: memref<1x6x256xf32, #tpu.memory_space<vmem>>, %arg3: memref<16x1xf32, #tpu.memory_space<vmem>>, %arg4: memref<1x16x256xf32, #tpu.memory_space<vmem>>, %arg5: memref<200x256xf32, #tpu.memory_space<vmem>>) attributes {dimension_semantics = [#tpu.dimension_semantics<parallel>], iteration_bounds = array<i64: 2>, scalar_prefetch = 0 : i64, scratch_operands = 1 : i64, tpu.core_type = #tpu.core_type<tc>, window_params = [{pipeline_mode = #tpu.pipeline_mode<synchronous>, transform_indices = @transform_0, window_bounds = array<i64: 16, 200>}, {transform_indices = @transform_1, window_bounds = array<i64: 1, 6, 256>}, {pipeline_mode = #tpu.pipeline_mode<synchronous>, transform_indices = @transform_2, window_bounds = array<i64: 16, 1>}, {transform_indices = @transform_3, window_bounds = array<i64: 1, 16, 256>}]} {
    %cst = arith.constant 0.000000e+00 : f32
    %0 = vector.broadcast %cst : f32 to vector<200x256xf32>
    %c0 = arith.constant 0 : index
    %c0_0 = arith.constant 0 : index
    %1 = vector.load %arg5[%c0, %c0_0] : memref<200x256xf32, #tpu.memory_space<vmem>>, vector<200x256xf32>
    tpu.vector_store %arg5[%c0, %c0_0], %0 {strides = array<i32>} : memref<200x256xf32, #tpu.memory_space<vmem>>, vector<200x256xf32>,
    %c0_1 = arith.constant 0 : index
    %c0_2 = arith.constant 0 : index
    %c0_3 = arith.constant 0 : index
    %2 = vector.load %arg2[%c0_1, %c0_2, %c0_3] : memref<1x6x256xf32, #tpu.memory_space<vmem>>, vector<1x6x256xf32>
    %3 = vector.shape_cast %2 : vector<1x6x256xf32> to vector<6x256xf32>
    %4 = vector.extract_strided_slice %3 {offsets = [0, 0], sizes = [6, 188], strides = [1, 1]} : vector<6x256xf32> to vector<6x188xf32>
    %c0_4 = arith.constant 0 : index
    %c0_5 = arith.constant 0 : index
    %5 = vector.load %arg5[%c0_4, %c0_5] : memref<200x256xf32, #tpu.memory_space<vmem>>, vector<6x188xf32>
    tpu.vector_store %arg5[%c0_4, %c0_5], %4 {strides = array<i32>} : memref<200x256xf32, #tpu.memory_space<vmem>>, vector<6x188xf32>,
    %6 = vector.extract_strided_slice %3 {offsets = [0, 1], sizes = [6, 188], strides = [1, 1]} : vector<6x256xf32> to vector<6x188xf32>
    %c8 = arith.constant 8 : index
    %c0_6 = arith.constant 0 : index
    %7 = vector.load %arg5[%c8, %c0_6] : memref<200x256xf32, #tpu.memory_space<vmem>>, vector<6x188xf32>
    tpu.vector_store %arg5[%c8, %c0_6], %6 {strides = array<i32>} : memref<200x256xf32, #tpu.memory_space<vmem>>, vector<6x188xf32>,
    %8 = vector.extract_strided_slice %3 {offsets = [0, 2], sizes = [6, 188], strides = [1, 1]} : vector<6x256xf32> to vector<6x188xf32>
    %c16 = arith.constant 16 : index
    %c0_7 = arith.constant 0 : index
    %9 = vector.load %arg5[%c16, %c0_7] : memref<200x256xf32, #tpu.memory_space<vmem>>, vector<6x188xf32>
    tpu.vector_store %arg5[%c16, %c0_7], %8 {strides = array<i32>} : memref<200x256xf32, #tpu.memory_space<vmem>>, vector<6x188xf32>,
    %10 = vector.extract_strided_slice %3 {offsets = [0, 3], sizes = [6, 188], strides = [1, 1]} : vector<6x256xf32> to vector<6x188xf32>
    %c24 = arith.constant 24 : index
    %c0_8 = arith.constant 0 : index
    %11 = vector.load %arg5[%c24, %c0_8] : memref<200x256xf32, #tpu.memory_space<vmem>>, vector<6x188xf32>
    tpu.vector_store %arg5[%c24, %c0_8], %10 {strides = array<i32>} : memref<200x256xf32, #tpu.memory_space<vmem>>, vector<6x188xf32>,
    %12 = vector.extract_strided_slice %3 {offsets = [0, 4], sizes = [6, 188], strides = [1, 1]} : vector<6x256xf32> to vector<6x188xf32>
    %c32 = arith.constant 32 : index
    %c0_9 = arith.constant 0 : index
    %13 = vector.load %arg5[%c32, %c0_9] : memref<200x256xf32, #tpu.memory_space<vmem>>, vector<6x188xf32>
    tpu.vector_store %arg5[%c32, %c0_9], %12 {strides = array<i32>} : memref<200x256xf32, #tpu.memory_space<vmem>>, vector<6x188xf32>,
    %14 = vector.extract_strided_slice %3 {offsets = [0, 16], sizes = [6, 188], strides = [1, 1]} : vector<6x256xf32> to vector<6x188xf32>
    %c40 = arith.constant 40 : index
    %c0_10 = arith.constant 0 : index
    %15 = vector.load %arg5[%c40, %c0_10] : memref<200x256xf32, #tpu.memory_space<vmem>>, vector<6x188xf32>
    tpu.vector_store %arg5[%c40, %c0_10], %14 {strides = array<i32>} : memref<200x256xf32, #tpu.memory_space<vmem>>, vector<6x188xf32>,
    %16 = vector.extract_strided_slice %3 {offsets = [0, 17], sizes = [6, 188], strides = [1, 1]} : vector<6x256xf32> to vector<6x188xf32>
    %c48 = arith.constant 48 : index
    %c0_11 = arith.constant 0 : index
    %17 = vector.load %arg5[%c48, %c0_11] : memref<200x256xf32, #tpu.memory_space<vmem>>, vector<6x188xf32>
    tpu.vector_store %arg5[%c48, %c0_11], %16 {strides = array<i32>} : memref<200x256xf32, #tpu.memory_space<vmem>>, vector<6x188xf32>,
    %18 = vector.extract_strided_slice %3 {offsets = [0, 18], sizes = [6, 188], strides = [1, 1]} : vector<6x256xf32> to vector<6x188xf32>
    %c56 = arith.constant 56 : index
    %c0_12 = arith.constant 0 : index
    %19 = vector.load %arg5[%c56, %c0_12] : memref<200x256xf32, #tpu.memory_space<vmem>>, vector<6x188xf32>
    tpu.vector_store %arg5[%c56, %c0_12], %18 {strides = array<i32>} : memref<200x256xf32, #tpu.memory_space<vmem>>, vector<6x188xf32>,
    %20 = vector.extract_strided_slice %3 {offsets = [0, 19], sizes = [6, 188], strides = [1, 1]} : vector<6x256xf32> to vector<6x188xf32>
    %c64 = arith.constant 64 : index
    %c0_13 = arith.constant 0 : index
    %21 = vector.load %arg5[%c64, %c0_13] : memref<200x256xf32, #tpu.memory_space<vmem>>, vector<6x188xf32>
    tpu.vector_store %arg5[%c64, %c0_13], %20 {strides = array<i32>} : memref<200x256xf32, #tpu.memory_space<vmem>>, vector<6x188xf32>,
    %22 = vector.extract_strided_slice %3 {offsets = [0, 20], sizes = [6, 188], strides = [1, 1]} : vector<6x256xf32> to vector<6x188xf32>
    %c72 = arith.constant 72 : index
    %c0_14 = arith.constant 0 : index
    %23 = vector.load %arg5[%c72, %c0_14] : memref<200x256xf32, #tpu.memory_space<vmem>>, vector<6x188xf32>
    tpu.vector_store %arg5[%c72, %c0_14], %22 {strides = array<i32>} : memref<200x256xf32, #tpu.memory_space<vmem>>, vector<6x188xf32>,
    %24 = vector.extract_strided_slice %3 {offsets = [0, 32], sizes = [6, 188], strides = [1, 1]} : vector<6x256xf32> to vector<6x188xf32>
    %c80 = arith.constant 80 : index
    %c0_15 = arith.constant 0 : index
    %25 = vector.load %arg5[%c80, %c0_15] : memref<200x256xf32, #tpu.memory_space<vmem>>, vector<6x188xf32>
    tpu.vector_store %arg5[%c80, %c0_15], %24 {strides = array<i32>} : memref<200x256xf32, #tpu.memory_space<vmem>>, vector<6x188xf32>,
    %26 = vector.extract_strided_slice %3 {offsets = [0, 33], sizes = [6, 188], strides = [1, 1]} : vector<6x256xf32> to vector<6x188xf32>
    %c88 = arith.constant 88 : index
    %c0_16 = arith.constant 0 : index
    %27 = vector.load %arg5[%c88, %c0_16] : memref<200x256xf32, #tpu.memory_space<vmem>>, vector<6x188xf32>
    tpu.vector_store %arg5[%c88, %c0_16], %26 {strides = array<i32>} : memref<200x256xf32, #tpu.memory_space<vmem>>, vector<6x188xf32>,
    %28 = vector.extract_strided_slice %3 {offsets = [0, 34], sizes = [6, 188], strides = [1, 1]} : vector<6x256xf32> to vector<6x188xf32>
    %c96 = arith.constant 96 : index
    %c0_17 = arith.constant 0 : index
    %29 = vector.load %arg5[%c96, %c0_17] : memref<200x256xf32, #tpu.memory_space<vmem>>, vector<6x188xf32>
    tpu.vector_store %arg5[%c96, %c0_17], %28 {strides = array<i32>} : memref<200x256xf32, #tpu.memory_space<vmem>>, vector<6x188xf32>,
    %30 = vector.extract_strided_slice %3 {offsets = [0, 35], sizes = [6, 188], strides = [1, 1]} : vector<6x256xf32> to vector<6x188xf32>
    %c104 = arith.constant 104 : index
    %c0_18 = arith.constant 0 : index
    %31 = vector.load %arg5[%c104, %c0_18] : memref<200x256xf32, #tpu.memory_space<vmem>>, vector<6x188xf32>
    tpu.vector_store %arg5[%c104, %c0_18], %30 {strides = array<i32>} : memref<200x256xf32, #tpu.memory_space<vmem>>, vector<6x188xf32>,
    %32 = vector.extract_strided_slice %3 {offsets = [0, 36], sizes = [6, 188], strides = [1, 1]} : vector<6x256xf32> to vector<6x188xf32>
    %c112 = arith.constant 112 : index
    %c0_19 = arith.constant 0 : index
    %33 = vector.load %arg5[%c112, %c0_19] : memref<200x256xf32, #tpu.memory_space<vmem>>, vector<6x188xf32>
    tpu.vector_store %arg5[%c112, %c0_19], %32 {strides = array<i32>} : memref<200x256xf32, #tpu.memory_space<vmem>>, vector<6x188xf32>,
    %34 = vector.extract_strided_slice %3 {offsets = [0, 48], sizes = [6, 188], strides = [1, 1]} : vector<6x256xf32> to vector<6x188xf32>
    %c120 = arith.constant 120 : index
    %c0_20 = arith.constant 0 : index
    %35 = vector.load %arg5[%c120, %c0_20] : memref<200x256xf32, #tpu.memory_space<vmem>>, vector<6x188xf32>
    tpu.vector_store %arg5[%c120, %c0_20], %34 {strides = array<i32>} : memref<200x256xf32, #tpu.memory_space<vmem>>, vector<6x188xf32>,
    %36 = vector.extract_strided_slice %3 {offsets = [0, 49], sizes = [6, 188], strides = [1, 1]} : vector<6x256xf32> to vector<6x188xf32>
    %c128 = arith.constant 128 : index
    %c0_21 = arith.constant 0 : index
    %37 = vector.load %arg5[%c128, %c0_21] : memref<200x256xf32, #tpu.memory_space<vmem>>, vector<6x188xf32>
    tpu.vector_store %arg5[%c128, %c0_21], %36 {strides = array<i32>} : memref<200x256xf32, #tpu.memory_space<vmem>>, vector<6x188xf32>,
    %38 = vector.extract_strided_slice %3 {offsets = [0, 50], sizes = [6, 188], strides = [1, 1]} : vector<6x256xf32> to vector<6x188xf32>
    %c136 = arith.constant 136 : index
    %c0_22 = arith.constant 0 : index
    %39 = vector.load %arg5[%c136, %c0_22] : memref<200x256xf32, #tpu.memory_space<vmem>>, vector<6x188xf32>
    tpu.vector_store %arg5[%c136, %c0_22], %38 {strides = array<i32>} : memref<200x256xf32, #tpu.memory_space<vmem>>, vector<6x188xf32>,
    %40 = vector.extract_strided_slice %3 {offsets = [0, 51], sizes = [6, 188], strides = [1, 1]} : vector<6x256xf32> to vector<6x188xf32>
    %c144 = arith.constant 144 : index
    %c0_23 = arith.constant 0 : index
    %41 = vector.load %arg5[%c144, %c0_23] : memref<200x256xf32, #tpu.memory_space<vmem>>, vector<6x188xf32>
    tpu.vector_store %arg5[%c144, %c0_23], %40 {strides = array<i32>} : memref<200x256xf32, #tpu.memory_space<vmem>>, vector<6x188xf32>,
    %42 = vector.extract_strided_slice %3 {offsets = [0, 52], sizes = [6, 188], strides = [1, 1]} : vector<6x256xf32> to vector<6x188xf32>
    %c152 = arith.constant 152 : index
    %c0_24 = arith.constant 0 : index
    %43 = vector.load %arg5[%c152, %c0_24] : memref<200x256xf32, #tpu.memory_space<vmem>>, vector<6x188xf32>
    tpu.vector_store %arg5[%c152, %c0_24], %42 {strides = array<i32>} : memref<200x256xf32, #tpu.memory_space<vmem>>, vector<6x188xf32>,
    %44 = vector.extract_strided_slice %3 {offsets = [0, 64], sizes = [6, 188], strides = [1, 1]} : vector<6x256xf32> to vector<6x188xf32>
    %c160 = arith.constant 160 : index
    %c0_25 = arith.constant 0 : index
    %45 = vector.load %arg5[%c160, %c0_25] : memref<200x256xf32, #tpu.memory_space<vmem>>, vector<6x188xf32>
    tpu.vector_store %arg5[%c160, %c0_25], %44 {strides = array<i32>} : memref<200x256xf32, #tpu.memory_space<vmem>>, vector<6x188xf32>,
    %46 = vector.extract_strided_slice %3 {offsets = [0, 65], sizes = [6, 188], strides = [1, 1]} : vector<6x256xf32> to vector<6x188xf32>
    %c168 = arith.constant 168 : index
    %c0_26 = arith.constant 0 : index
    %47 = vector.load %arg5[%c168, %c0_26] : memref<200x256xf32, #tpu.memory_space<vmem>>, vector<6x188xf32>
    tpu.vector_store %arg5[%c168, %c0_26], %46 {strides = array<i32>} : memref<200x256xf32, #tpu.memory_space<vmem>>, vector<6x188xf32>,
    %48 = vector.extract_strided_slice %3 {offsets = [0, 66], sizes = [6, 188], strides = [1, 1]} : vector<6x256xf32> to vector<6x188xf32>
    %c176 = arith.constant 176 : index
    %c0_27 = arith.constant 0 : index
    %49 = vector.load %arg5[%c176, %c0_27] : memref<200x256xf32, #tpu.memory_space<vmem>>, vector<6x188xf32>
    tpu.vector_store %arg5[%c176, %c0_27], %48 {strides = array<i32>} : memref<200x256xf32, #tpu.memory_space<vmem>>, vector<6x188xf32>,
    %50 = vector.extract_strided_slice %3 {offsets = [0, 67], sizes = [6, 188], strides = [1, 1]} : vector<6x256xf32> to vector<6x188xf32>
    %c184 = arith.constant 184 : index
    %c0_28 = arith.constant 0 : index
    %51 = vector.load %arg5[%c184, %c0_28] : memref<200x256xf32, #tpu.memory_space<vmem>>, vector<6x188xf32>
    tpu.vector_store %arg5[%c184, %c0_28], %50 {strides = array<i32>} : memref<200x256xf32, #tpu.memory_space<vmem>>, vector<6x188xf32>,
    %52 = vector.extract_strided_slice %3 {offsets = [0, 68], sizes = [6, 188], strides = [1, 1]} : vector<6x256xf32> to vector<6x188xf32>
    %c192 = arith.constant 192 : index
    %c0_29 = arith.constant 0 : index
    %53 = vector.load %arg5[%c192, %c0_29] : memref<200x256xf32, #tpu.memory_space<vmem>>, vector<6x188xf32>
    tpu.vector_store %arg5[%c192, %c0_29], %52 {strides = array<i32>} : memref<200x256xf32, #tpu.memory_space<vmem>>, vector<6x188xf32>,
    %c0_30 = arith.constant 0 : index
    %c0_31 = arith.constant 0 : index
    %54 = vector.load %arg1[%c0_30, %c0_31] : memref<16x200xf32, #tpu.memory_space<vmem>>, vector<16x200xf32>
    %c0_32 = arith.constant 0 : index
    %c0_33 = arith.constant 0 : index
    %55 = vector.load %arg5[%c0_32, %c0_33] : memref<200x256xf32, #tpu.memory_space<vmem>>, vector<200x256xf32>
    %cst_34 = arith.constant dense<0.000000e+00> : vector<16x256xf32>
    %56 = tpu.matmul %54, %55, %cst_34 {dimension_numbers = #tpu.dot_dimension_numbers<[1], [0], [0], [1], [0, 0, 1, 1], [], []>} : vector<16x200xf32>, vector<200x256xf32>, vector<16x256xf32> -> vector<16x256xf32>
    %c0_35 = arith.constant 0 : index
    %c0_36 = arith.constant 0 : index
    %57 = vector.load %arg3[%c0_35, %c0_36] : memref<16x1xf32, #tpu.memory_space<vmem>>, vector<16x1xf32>
    %58 = vector.broadcast %57 : vector<16x1xf32> to vector<16x256xf32>
    %59 = arith.addf %56, %58 : vector<16x256xf32>
    %c0_37 = arith.constant 0 : index
    %c0_38 = arith.constant 0 : index
    %c0_39 = arith.constant 0 : index
    %60 = vector.load %arg4[%c0_37, %c0_38, %c0_39] : memref<1x16x256xf32, #tpu.memory_space<vmem>>, vector<1x16x256xf32>
    %61 = vector.shape_cast %60 : vector<1x16x256xf32> to vector<16x256xf32>
    %62 = vector.shape_cast %59 : vector<16x256xf32> to vector<1x16x256xf32>
    tpu.vector_store %arg4[%c0_37, %c0_38, %c0_39], %62 {strides = array<i32>} : memref<1x16x256xf32, #tpu.memory_space<vmem>>, vector<1x16x256xf32>,
    return
  }
  func.func @transform_0(%arg0: i32) -> (i32, i32) {
    %c0_i32 = arith.constant 0 : i32
    %c0_i32_0 = arith.constant 0 : i32
    %c0_i32_1 = arith.constant 0 : i32
    return %c0_i32, %c0_i32_0 : i32, i32
  }
  func.func @transform_1(%arg0: i32) -> (i32, i32, i32) {
    %c0_i32 = arith.constant 0 : i32
    %c0_i32_0 = arith.constant 0 : i32
    %c0_i32_1 = arith.constant 0 : i32
    return %arg0, %c0_i32, %c0_i32_0 : i32, i32, i32
  }
  func.func @transform_2(%arg0: i32) -> (i32, i32) {
    %c0_i32 = arith.constant 0 : i32
    %c0_i32_0 = arith.constant 0 : i32
    %c0_i32_1 = arith.constant 0 : i32
    return %c0_i32, %c0_i32_0 : i32, i32
  }
  func.func @transform_3(%arg0: i32) -> (i32, i32, i32) {
    %c0_i32 = arith.constant 0 : i32
    %c0_i32_0 = arith.constant 0 : i32
    %c0_i32_1 = arith.constant 0 : i32
    return %arg0, %c0_i32, %c0_i32_0 : i32, i32, i32
  }
}

</mosaic_0001>

<bundles_post_ra>
// kernel: layer_c3_forward.1
= control target key start
LH: loop header
LB: loop body
LE: loop exit
PB: predicated region body
PF: predicated region fallthrough
CT: control target
= control target key end

     0   :  { %s799_s12 = smov 0   ;;  %s1013_s0 = inlined_call_operand.vmem [shape: f32[16,200], index: 0, kind: input, shape index: {}]   ;;  %s1014_s1 = inlined_call_operand.vmem [shape: f32[2,6,256], index: 1, kind: input, shape index: {}]   ;;  %s1015_s2 = inlined_call_operand.vmem [shape: f32[16,1], index: 2, kind: input, shape index: {}]   ;;  %s1016_s3 = inlined_call_operand.vmem [shape: f32[2,16,256], index: 3, kind: output, shape index: {}]  }
   0x1 LB: > { %s692_s13 = sadd.s32 4294967295, %s751_s12   ;;  %p696_p0 = scmp.ge.s32.totalorder %s751_s12, 1  ;;  %s751_s12 = sphi %s799_s12, %s13_s12  }
   0x2   : > { %p137_p1 = scmp.lt.s32.totalorder %s751_s12, 3 }
   0x4   : > { %p138_p2 = pnand %p696_p0, %p137_p1 }
   0x5   : > { %p161_p3 = scmp.lt.s32.totalorder (!%p138_p2), %s692_s13, 1  ;;  %s753_s18 = smov (!%p138_p2), 93  }
   0x6   : > { %141 = sbr.rel (%p138_p2) target bundleno = 401 (0x191), region = 32  ;;  %s754_s19 = smov (!%p138_p2), 80  }
   0x7   : > { %s755_s20 = smov (!%p138_p2), 94   ;;  %s756_s21 = smov (!%p138_p2), 92  }
   0x8   : > { %s757_s22 = smov (!%p138_p2), 95   ;;  %s758_s23 = smov (!%p138_p2), 96  }
   0x9   : > { %s759_s24 = smov (!%p138_p2), 108   ;;  %s760_s25 = smov (!%p138_p2), 109  }
   0xa   : > { %s761_s26 = smov (!%p138_p2), 110   ;;  %s762_s27 = smov (!%p138_p2), 60  }
   0xb   : > { %s1018_s13 = smov (!%p161_p3, %s692_s13), 1  ;;  %s763_s28 = smov 111   ;;  %v767_v2 = vmov 0.0   ;;  %vm224_vm0 = vcmask 488448   ;;  %vm362_vm1 = vcmask 752640   ;;  %vm372_vm2 = vcmask 654336  }
   0xc   : > { %s707_s14 = sshll.u32 %s1018_s13, 4  ;;  %s764_s29 = smov 61   ;;  %196 = vst [vmem:[#allocation2 + $0xc8] sm:$0xff] %v767_v2  ;;  %vm332_vm3 = vcmask 777216   ;;  %vm352_vm4 = vcmask 760832   ;;  %vm342_vm5 = vcmask 769024  }
   0xd   : > { %s165_s17 = scalar_lea.vmem %s1014_s1, %s707_s14  ;;  %s765_s30 = smov 112   ;;  %171 = vst [vmem:[#allocation2] sm:$0xff] %v767_v2  ;;  %vm322_vm6 = vcmask 785408   ;;  %vm462_vm7 = vcmask 490496   ;;  %vm312_vm8 = vcmask 883712   ;;  %vm282_vm9 = vcmask 908288  }
   0xe   : > { %v813_v0 = vld [vmem:[%s165_s17 + $0x8] sm:$0x3f]  ;;  %v818_v1 = vld [vmem:[%s165_s17] sm:$0x3f]  ;;  %s766_s4 = smov 62   ;;  %172 = vst [vmem:[#allocation2 + $0x8] sm:$0xff] %v767_v2 }
   0xf   : > { %350 = vrot.lane.b32.xlu1 %v813_v0, %s753_s18  ;;  %370 = vrot.lane.b32.xlu0 %v813_v0, %s754_s19  ;;  %173 = vst [vmem:[#allocation2 + $0x10] sm:$0xff] %v767_v2  ;;  %s768_s5 = smov 124   ;;  %s769_s6 = smov 63   ;;  %vm302_vm10 = vcmask 891904   ;;  %vm292_vm11 = vcmask 900096   ;;  %vm432_vm12 = vcmask 515072  }
  0x10   : > { %340 = vrot.lane.b32.xlu2 %v813_v0, %s755_s20  ;;  %174 = vst [vmem:[#allocation2 + $0x18] sm:$0xff] %v767_v2  ;;  %s770_s7 = smov 125   ;;  %s771_s8 = smov 64   ;;  %vm452_vm13 = vcmask 498688   ;;  %vm252_vm14 = vcmask 1022976   ;;  %vm272_vm15 = vcmask 916480  }
  0x11   : > { %175 = vst [vmem:[#allocation2 + $0x20] sm:$0xff] %v767_v2  ;;  %s772_s9 = smov 126   ;;  %s773_s10 = smov 76  }
  0x12   : > { %176 = vst [vmem:[#allocation2 + $0x28] sm:$0xff] %v767_v2  ;;  %s774_s11 = smov 127   ;;  %s775_s14 = smov 77  }
  0x13   : > { %177 = vst [vmem:[#allocation2 + $0x30] sm:$0xff] %v767_v2  ;;  %s776_s15 = smov 78   ;;  %s777_s16 = smov 79  }
  0x14   : > { %178 = vst [vmem:[#allocation2 + $0x38] sm:$0xff] %v767_v2 }
  0x15   : > { %179 = vst [vmem:[#allocation2 + $0x40] sm:$0xff] %v767_v2 }
  0x16   : > { %180 = vst [vmem:[#allocation2 + $0x48] sm:$0xff] %v767_v2 }
  0x17   : > { %360 = vrot.lane.b32.xlu0 %v813_v0, %s756_s21  ;;  %368 = vrot.lane.b32.xlu1 %v818_v1, %s754_s19  ;;  %181 = vst [vmem:[#allocation2 + $0x50] sm:$0xff] %v767_v2 }
  0x18   : > { %358 = vrot.lane.b32.xlu2 %v818_v1, %s756_s21  ;;  %182 = vst [vmem:[#allocation2 + $0x58] sm:$0xff] %v767_v2 }
  0x19   : > { %183 = vst [vmem:[#allocation2 + $0x60] sm:$0xff] %v767_v2 }
  0x1a   : > { %184 = vst [vmem:[#allocation2 + $0x68] sm:$0xff] %v767_v2 }
  0x1b   : > { %185 = vst [vmem:[#allocation2 + $0x70] sm:$0xff] %v767_v2 }
  0x1c   : > { %186 = vst [vmem:[#allocation2 + $0x78] sm:$0xff] %v767_v2 }
  0x1d   : > { %187 = vst [vmem:[#allocation2 + $0x80] sm:$0xff] %v767_v2 }
  0x1e   : > { %188 = vst [vmem:[#allocation2 + $0x88] sm:$0xff] %v767_v2 }
  0x1f   : > { %330 = vrot.lane.b32.xlu0 %v813_v0, %s757_s22  ;;  %348 = vrot.lane.b32.xlu1 %v818_v1, %s753_s18  ;;  %189 = vst [vmem:[#allocation2 + $0x90] sm:$0xff] %v767_v2 }
  0x20   : > { %320 = vrot.lane.b32.xlu2 %v813_v0, %s758_s23  ;;  %190 = vst [vmem:[#allocation2 + $0x98] sm:$0xff] %v767_v2 }
  0x21   : > { %191 = vst [vmem:[#allocation2 + $0xa0] sm:$0xff] %v767_v2 }
  0x22   : > { %192 = vst [vmem:[#allocation2 + $0xa8] sm:$0xff] %v767_v2 }
  0x23   : > { %193 = vst [vmem:[#allocation2 + $0xb0] sm:$0xff] %v767_v2 }
  0x24   : > { %194 = vst [vmem:[#allocation2 + $0xb8] sm:$0xff] %v767_v2 }
  0x25   : > { %195 = vst [vmem:[#allocation2 + $0xc0] sm:$0xff] %v767_v2 }
  0x26   : > { %197 = vst [vmem:[#allocation2 + $0xd0] sm:$0xff] %v767_v2 }
  0x27   : > { %338 = vrot.lane.b32.xlu0 %v818_v1, %s755_s20  ;;  %310 = vrot.lane.b32.xlu1 %v813_v0, %s759_s24  ;;  %198 = vst [vmem:[#allocation2 + $0xd8] sm:$0xff] %v767_v2 }
  0x28   : > { %328 = vrot.lane.b32.xlu2 %v818_v1, %s757_s22  ;;  %199 = vst [vmem:[#allocation2 + $0xe0] sm:$0xff] %v767_v2 }
  0x29   : > { %200 = vst [vmem:[#allocation2 + $0xe8] sm:$0xff] %v767_v2 }
  0x2a   : > { %201 = vst [vmem:[#allocation2 + $0xf0] sm:$0xff] %v767_v2 }
  0x2b   : > { %202 = vst [vmem:[#allocation2 + $0xf8] sm:$0xff] %v767_v2 }
  0x2c   : > { %203 = vst [vmem:[#allocation2 + $0x100] sm:$0xff] %v767_v2 }
  0x2d   : > { %204 = vst [vmem:[#allocation2 + $0x108] sm:$0xff] %v767_v2 }
  0x2e   : > { %205 = vst [vmem:[#allocation2 + $0x110] sm:$0xff] %v767_v2 }
  0x2f   : > { %300 = vrot.lane.b32.xlu0 %v813_v0, %s760_s25  ;;  %318 = vrot.lane.b32.xlu1 %v818_v1, %s758_s23  ;;  %206 = vst [vmem:[#allocation2 + $0x118] sm:$0xff] %v767_v2 }
  0x30   : > { %290 = vrot.lane.b32.xlu2 %v813_v0, %s761_s26  ;;  %207 = vst [vmem:[#allocation2 + $0x120] sm:$0xff] %v767_v2 }
  0x31   : > { %208 = vst [vmem:[#allocation2 + $0x128] sm:$0xff] %v767_v2 }
  0x32   : > { %209 = vst [vmem:[#allocation2 + $0x130] sm:$0xff] %v767_v2 }
  0x33   : > { %210 = vst [vmem:[#allocation2 + $0x138] sm:$0xff] %v767_v2 }
  0x34   : > { %211 = vst [vmem:[#allocation2 + $0x140] sm:$0xff] %v767_v2 }
  0x35   : > { %212 = vst [vmem:[#allocation2 + $0x148] sm:$0xff] %v767_v2 }
  0x36   : > { %213 = vst [vmem:[#allocation2 + $0x150] sm:$0xff] %v767_v2 }
  0x37   : > { %460 = vrot.lane.b32.xlu0 %v813_v0, %s762_s27  ;;  %308 = vrot.lane.b32.xlu1 %v818_v1, %s759_s24  ;;  %214 = vst [vmem:[#allocation2 + $0x158] sm:$0xff] %v767_v2 }
  0x38   : > { %280 = vrot.lane.b32.xlu2 %v813_v0, %s763_s28  ;;  %215 = vst [vmem:[#allocation2 + $0x160] sm:$0xff] %v767_v2 }
  0x39   : > { %216 = vst [vmem:[#allocation2 + $0x168] sm:$0xff] %v767_v2 }
  0x3a   : > { %217 = vst [vmem:[#allocation2 + $0x170] sm:$0xff] %v767_v2 }
  0x3b   : > { %218 = vst [vmem:[#allocation2 + $0x178] sm:$0xff] %v767_v2 }
  0x3c   : > { %219 = vst [vmem:[#allocation2 + $0x180] sm:$0xff] %v767_v2 }
  0x3d   : > { %220 = vst [vmem:[#allocation2 + $0x188] sm:$0xff] %v767_v2 }
  0x3e   : > { %223 = vst [vmem:[#allocation2] sm:$0x3f] %v818_v1 }
  0x3f   : > { %450 = vrot.lane.b32.xlu0 %v813_v0, %s764_s29  ;;  %298 = vrot.lane.b32.xlu1 %v818_v1, %s760_s25  ;;  %225 = vst.msk [vmem:[#allocation2 + $0x8] sm:$0x3f] %vm224_vm0, %v813_v0 }
  0x40   : > { %270 = vrot.lane.b32.xlu2 %v813_v0, %s765_s30 }
  0x47   : > { %440 = vrot.lane.b32.xlu0 %v813_v0, %s766_s4  ;;  %288 = vrot.lane.b32.xlu1 %v818_v1, %s761_s26 }
  0x48   : > { %458 = vrot.lane.b32.xlu2 %v818_v1, %s762_s27 }
  0x4f   : > { %260 = vrot.lane.b32.xlu0 %v813_v0, %s768_s5  ;;  %430 = vrot.lane.b32.xlu1 %v813_v0, %s769_s6 }
  0x50   : > { %278 = vrot.lane.b32.xlu2 %v818_v1, %s763_s28 }
  0x57   : > { %448 = vrot.lane.b32.xlu0 %v818_v1, %s764_s29  ;;  %250 = vrot.lane.b32.xlu1 %v813_v0, %s770_s7  ;;  %s708_s29 = sshll.u32 %s1018_s13, 5 }
  0x58   : > { %420 = vrot.lane.b32.xlu2 %v813_v0, %s771_s8 }
  0x5f   : > { %268 = vrot.lane.b32.xlu0 %v818_v1, %s765_s30  ;;  %438 = vrot.lane.b32.xlu1 %v818_v1, %s766_s4 }
  0x60   : > { %240 = vrot.lane.b32.xlu2 %v813_v0, %s772_s9 }
  0x67   : > { %410 = vrot.lane.b32.xlu0 %v813_v0, %s773_s10  ;;  %258 = vrot.lane.b32.xlu1 %v818_v1, %s768_s5  ;;  %s170_s5 = scalar_lea.vmem %s1016_s3, %s708_s29 }
  0x68   : > { %428 = vrot.lane.b32.xlu2 %v818_v1, %s769_s6 }
  0x6a   : > { %v898_v3 = vpop.permute.xlu2 %340 }
  0x6b   : > { %347 = vst.msk [vmem:[#allocation2 + $0xc8] sm:$0x3f] %vm224_vm0, %v898_v3 }
  0x6f   : > { %230 = vrot.lane.b32.xlu0 %v813_v0, %s774_s11  ;;  %400 = vrot.lane.b32.xlu1 %v813_v0, %s775_s14 }
  0x70   : > { %248 = vrot.lane.b32.xlu2 %v818_v1, %s770_s7 }
  0x72   : > { %v359_v4 = vpop.permute.xlu2 %358  ;;  %v497_v24 = vld [vmem:[#allocation2 + $0xc8] sm:$0xff] }
  0x77   : > { %418 = vrot.lane.b32.xlu0 %v818_v1, %s771_s8  ;;  %390 = vrot.lane.b32.xlu1 %v813_v0, %s776_s15 }
  0x78   : > { %238 = vrot.lane.b32.xlu2 %v818_v1, %s772_s9 }
  0x7a   : > { %v928_v5 = vpop.permute.xlu2 %320 }
  0x7b   : > { %327 = vst.msk [vmem:[#allocation2 + $0xa8] sm:$0x3f] %vm224_vm0, %v928_v5 }
  0x7f   : > { %408 = vrot.lane.b32.xlu0 %v818_v1, %s773_s10  ;;  %380 = vrot.lane.b32.xlu1 %v813_v0, %s777_s16 }
  0x80   : > { %228 = vrot.lane.b32.xlu2 %v818_v1, %s774_s11 }
  0x81   : > { %v351_v6 = vpop.permute.xlu1 %350  ;;  %v371_v7 = vpop.permute.xlu0 %370 }
  0x82   : > { %357 = vst.msk [vmem:[#allocation2 + $0xd8] sm:$0x3f] %vm224_vm0, %v351_v6  ;;  %v329_v8 = vpop.permute.xlu2 %328  ;;  %v493_v28 = vld [vmem:[#allocation2 + $0xa8] sm:$0xff] }
  0x83   : > { %377 = vst.msk [vmem:[#allocation2 + $0xf8] sm:$0x3f] %vm224_vm0, %v371_v7 }
  0x87   : > { %398 = vrot.lane.b32.xlu0 %v818_v1, %s775_s14  ;;  %388 = vrot.lane.b32.xlu1 %v818_v1, %s776_s15 }
  0x88   : > { %378 = vrot.lane.b32.xlu2 %v818_v1, %s777_s16 }
  0x89   : > { %v361_v9 = vpop.permute.xlu0 %360  ;;  %v369_v10 = vpop.permute.xlu1 %368  ;;  %v499_v22 = vld [vmem:[#allocation2 + $0xd8] sm:$0xff] }
  0x8a   : > { %v363_v11 = vsel %vm362_vm1, %v359_v4, %v361_v9  ;;  %367 = vst.msk [vmem:[#allocation2 + $0xe8] sm:$0x3f] %vm224_vm0, %v361_v9  ;;  %v373_v12 = vsel %vm372_vm2, %v369_v10, %v371_v7  ;;  %v503_v13 = vld [vmem:[#allocation2 + $0xf8] sm:$0xff]  ;;  %v947_v14 = vpop.permute.xlu2 %290  ;;  %vm442_vm1 = vcmask 506880   ;;  %vm242_vm2 = vcmask 1031168  }
  0x8b   : > { %366 = vst [vmem:[#allocation2 + $0xe0] sm:$0x3f] %v363_v11  ;;  %587 = vmatpush.msra.mxu2 %v503_v13 }
  0x8c   : > { %376 = vst [vmem:[#allocation2 + $0xf0] sm:$0x3f] %v373_v12 }
  0x8d   : > { %297 = vst.msk [vmem:[#allocation2 + $0x78] sm:$0x3f] %vm224_vm0, %v947_v14 }
  0x91   : > { %v331_v15 = vpop.permute.xlu0 %330  ;;  %v349_v16 = vpop.permute.xlu1 %348  ;;  %v501_v17 = vld [vmem:[#allocation2 + $0xe8] sm:$0xff] }
  0x92   : > { %v333_v18 = vsel %vm332_vm3, %v329_v8, %v331_v15  ;;  %337 = vst.msk [vmem:[#allocation2 + $0xb8] sm:$0x3f] %vm224_vm0, %v331_v15  ;;  %v353_v19 = vsel %vm352_vm4, %v349_v16, %v351_v6  ;;  %588 = vmatpush.msra.mxu2 %v501_v17  ;;  %v281_v20 = vpop.permute.xlu2 %280  ;;  %v500_v23 = vld [vmem:[#allocation2 + $0xe0] sm:$0xff]  ;;  %vm262_vm3 = vcmask 1014784   ;;  %vm232_vm4 = vcmask 1039360  }
  0x93   : > { %336 = vst [vmem:[#allocation2 + $0xb0] sm:$0x3f] %v333_v18  ;;  %v502_v21 = vld [vmem:[#allocation2 + $0xf0] sm:$0xff] }
  0x94   : > { %356 = vst [vmem:[#allocation2 + $0xd0] sm:$0x3f] %v353_v19  ;;  %541 = vmatpush.msra.mxu0 %v502_v21  ;;  %589 = vmatpush.msra.mxu2 %v499_v22  ;;  %v487_v42 = vld [vmem:[#allocation2 + $0x78] sm:$0xff] }
  0x95   : > { %287 = vst.msk [vmem:[#allocation2 + $0x68] sm:$0x3f] %vm224_vm0, %v281_v20 }
  0x96   : > { %542 = vmatpush.msra.mxu0 %v500_v23  ;;  %590 = vmatpush.msra.mxu2 %v497_v24 }
  0x99   : > { %v339_v25 = vpop.permute.xlu0 %338  ;;  %v311_v26 = vpop.permute.xlu1 %310  ;;  %v495_v27 = vld [vmem:[#allocation2 + $0xb8] sm:$0xff] }
  0x9a   : > { %v343_v29 = vsel %vm342_vm5, %v339_v25, %v898_v3  ;;  %317 = vst.msk [vmem:[#allocation2 + $0x98] sm:$0x3f] %vm224_vm0, %v311_v26  ;;  %591 = vmatpush.msra.mxu2 %v495_v27  ;;  %v955_v30 = vpop.permute.xlu2 %270  ;;  %v494_v38 = vld [vmem:[#allocation2 + $0xb0] sm:$0xff]  ;;  %vm422_vm5 = vcmask 523264  }
  0x9b   : > { %346 = vst [vmem:[#allocation2 + $0xc0] sm:$0x3f] %v343_v29  ;;  %v498_v31 = vld [vmem:[#allocation2 + $0xd0] sm:$0xff] }
  0x9c   : > { %277 = vst.msk [vmem:[#allocation2 + $0x58] sm:$0x3f] %vm224_vm0, %v955_v30  ;;  %543 = vmatpush.msra.mxu0 %v498_v31  ;;  %592 = vmatpush.msra.mxu2 %v493_v28  ;;  %v485_v48 = vld [vmem:[#allocation2 + $0x68] sm:$0xff] }
  0xa1   : > { %v301_v32 = vpop.permute.xlu0 %300  ;;  %v319_v33 = vpop.permute.xlu1 %318  ;;  %v491_v34 = vld [vmem:[#allocation2 + $0x98] sm:$0xff] }
  0xa2   : > { %307 = vst.msk [vmem:[#allocation2 + $0x88] sm:$0x3f] %vm224_vm0, %v301_v32  ;;  %v323_v35 = vsel %vm322_vm6, %v319_v33, %v928_v5  ;;  %v459_v36 = vpop.permute.xlu2 %458  ;;  %v496_v37 = vld [vmem:[#allocation2 + $0xc0] sm:$0xff]  ;;  %593 = vmatpush.msra.mxu2 %v491_v34  ;;  %vm412_vm6 = vcmask 621568  }
  0xa3   : > { %326 = vst [vmem:[#allocation2 + $0xa0] sm:$0x3f] %v323_v35  ;;  %544 = vmatpush.msra.mxu0 %v496_v37  ;;  %v483_v49 = vld [vmem:[#allocation2 + $0x58] sm:$0xff] }
  0xa5   : > { %545 = vmatpush.msra.mxu0 %v494_v38 }
  0xa9   : > { %v461_v39 = vpop.permute.xlu0 %460  ;;  %v309_v40 = vpop.permute.xlu1 %308  ;;  %v489_v41 = vld [vmem:[#allocation2 + $0x88] sm:$0xff] }
  0xaa   : > { %v463_v43 = vsel %vm462_vm7, %v459_v36, %v461_v39  ;;  %467 = vst.msk [vmem:[#allocation2 + $0x188] sm:$0x3f] %vm224_vm0, %v461_v39  ;;  %v313_v44 = vsel %vm312_vm8, %v309_v40, %v311_v26  ;;  %594 = vmatpush.msra.mxu2 %v489_v41  ;;  %v279_v45 = vpop.permute.xlu2 %278  ;;  %v492_v46 = vld [vmem:[#allocation2 + $0xa0] sm:$0xff]  ;;  %v473_v40 = vld [vmem:[#allocation2 + $0x8] sm:$0xff]  ;;  %v778_v41 = vmov 0   ;;  %vm382_vm7 = vcmask 646144  }
  0xab   : > { %466 = vst [vmem:[#allocation2 + $0x180] sm:$0x3f] %v463_v43  ;;  %v283_v47 = vsel %vm282_vm9, %v279_v45, %v281_v20  ;;  %546 = vmatpush.msra.mxu0 %v492_v46  ;;  %743 = vset.pattern.permute.xlu0 %v778_v41  ;;  %v472_v45 = vld [vmem:[#allocation2] sm:$0xff]  ;;  %vm402_vm8 = vcmask 629760   ;;  %vm392_vm9 = vcmask 637952  }
  0xac   : > { %316 = vst [vmem:[#allocation2 + $0x90] sm:$0x3f] %v313_v44  ;;  %595 = vmatpush.msra.mxu2 %v487_v42  ;;  %744 = vset.pattern.permute.xlu1 %v778_v41  ;;  %v468_v44 = vld [vmem:[%s1013_s0] sm:$0xff] }
  0xad   : > { %286 = vst [vmem:[#allocation2 + $0x60] sm:$0x3f] %v283_v47 }
  0xae   : > { %596 = vmatpush.msra.mxu2 %v485_v48  ;;  %v522_v48 = vld [vmem:[%s1015_s2] sm:$0xff] }
  0xaf   : > { %526 = vperm.xlu0 %743, %v522_v48  }
  0xb0   : > { %597 = vmatpush.msra.mxu2 %v483_v49  ;;  %v523_v49 = vld [vmem:[%s1015_s2 + $0x8] sm:$0xff] }
  0xb1   : > { %v451_v50 = vpop.permute.xlu0 %450  ;;  %v299_v51 = vpop.permute.xlu1 %298  ;;  %v521_v52 = vld [vmem:[#allocation2 + $0x188] sm:$0xff]  ;;  %531 = vperm.xlu1 %744, %v523_v49  }
  0xb2   : > { %457 = vst.msk [vmem:[#allocation2 + $0x178] sm:$0x3f] %vm224_vm0, %v451_v50  ;;  %v303_v53 = vsel %vm302_vm10, %v299_v51, %v301_v32  ;;  %617 = vmatpush.msra.mxu3 %v521_v52  ;;  %v520_v54 = vld [vmem:[#allocation2 + $0x180] sm:$0xff]  ;;  %v963_v55 = vpop.permute.xlu2 %420  ;;  %vm534_vm10 = vcmask 588800  }
  0xb3   : > { %306 = vst [vmem:[#allocation2 + $0x80] sm:$0x3f] %v303_v53  ;;  %571 = vmatpush.msra.mxu1 %v520_v54  ;;  %v490_v56 = vld [vmem:[#allocation2 + $0x90] sm:$0xff] }
  0xb4   : > { %427 = vst.msk [vmem:[#allocation2 + $0x148] sm:$0x3f] %vm224_vm0, %v963_v55  ;;  %547 = vmatpush.msra.mxu0 %v490_v56  ;;  %v484_v5 = vld [vmem:[#allocation2 + $0x60] sm:$0xff]  ;;  %v470_v56 = vld [vmem:[%s1013_s0 + $0x10] sm:$0xff] }
  0xb9   : > { %v441_v57 = vpop.permute.xlu0 %440  ;;  %v289_v58 = vpop.permute.xlu1 %288  ;;  %v519_v59 = vld [vmem:[#allocation2 + $0x178] sm:$0xff] }
  0xba   : > { %447 = vst.msk [vmem:[#allocation2 + $0x168] sm:$0x3f] %vm224_vm0, %v441_v57  ;;  %v293_v60 = vsel %vm292_vm11, %v289_v58, %v947_v14  ;;  %618 = vmatpush.msra.mxu3 %v519_v59  ;;  %v241_v61 = vpop.permute.xlu2 %240  ;;  %v488_v62 = vld [vmem:[#allocation2 + $0x80] sm:$0xff] }
  0xbb   : > { %296 = vst [vmem:[#allocation2 + $0x70] sm:$0x3f] %v293_v60  ;;  %548 = vmatpush.msra.mxu0 %v488_v62  ;;  %v513_v12 = vld [vmem:[#allocation2 + $0x148] sm:$0xff] }
  0xbc   : > { %247 = vst.msk [vmem:[#allocation2 + $0x28] sm:$0x3f] %vm224_vm0, %v241_v61 }
  0xc1   : > { %v261_v63 = vpop.permute.xlu0 %260  ;;  %v431_v0 = vpop.permute.xlu1 %430  ;;  %v517_v1 = vld [vmem:[#allocation2 + $0x168] sm:$0xff] }
  0xc2   : > { %267 = vst.msk [vmem:[#allocation2 + $0x48] sm:$0x3f] %vm224_vm0, %v261_v63  ;;  %619 = vmatpush.msra.mxu3 %v517_v1  ;;  %v429_v2 = vpop.permute.xlu2 %428  ;;  %v486_v3 = vld [vmem:[#allocation2 + $0x70] sm:$0xff] }
  0xc3   : > { %437 = vst.msk [vmem:[#allocation2 + $0x158] sm:$0x3f] %vm224_vm0, %v431_v0  ;;  %v433_v4 = vsel %vm432_vm12, %v429_v2, %v431_v0  ;;  %549 = vmatpush.msra.mxu0 %v486_v3  ;;  %v477_v17 = vld [vmem:[#allocation2 + $0x28] sm:$0xff]  ;;  %v471_v0 = vld [vmem:[%s1013_s0 + $0x18] sm:$0xff] }
  0xc4   : > { %436 = vst [vmem:[#allocation2 + $0x150] sm:$0x3f] %v433_v4 }
  0xc5   : > { %550 = vmatpush.msra.mxu0 %v484_v5 }
  0xc9   : > { %v449_v6 = vpop.permute.xlu0 %448  ;;  %v251_v7 = vpop.permute.xlu1 %250  ;;  %v481_v8 = vld [vmem:[#allocation2 + $0x48] sm:$0xff] }
  0xca   : > { %v453_v9 = vsel %vm452_vm13, %v449_v6, %v451_v50  ;;  %257 = vst.msk [vmem:[#allocation2 + $0x38] sm:$0x3f] %vm224_vm0, %v251_v7  ;;  %598 = vmatpush.msra.mxu2 %v481_v8  ;;  %v249_v10 = vpop.permute.xlu2 %248  ;;  %v515_v11 = vld [vmem:[#allocation2 + $0x158] sm:$0xff] }
  0xcb   : > { %456 = vst [vmem:[#allocation2 + $0x170] sm:$0x3f] %v453_v9  ;;  %v253_v13 = vsel %vm252_vm14, %v249_v10, %v251_v7  ;;  %620 = vmatpush.msra.mxu3 %v515_v11  ;;  %v514_v28 = vld [vmem:[#allocation2 + $0x150] sm:$0xff] }
  0xcc   : > { %256 = vst [vmem:[#allocation2 + $0x30] sm:$0x3f] %v253_v13 }
  0xcd   : > { %621 = vmatpush.msra.mxu3 %v513_v12 }
  0xd1   : > { %v269_v14 = vpop.permute.xlu0 %268  ;;  %v439_v15 = vpop.permute.xlu1 %438  ;;  %v479_v16 = vld [vmem:[#allocation2 + $0x38] sm:$0xff] }
  0xd2   : > { %v273_v18 = vsel %vm272_vm15, %v269_v14, %v955_v30  ;;  %v443_v19 = vsel %vm442_vm1, %v439_v15, %v441_v57  ;;  %v518_v20 = vld [vmem:[#allocation2 + $0x170] sm:$0xff]  ;;  %599 = vmatpush.msra.mxu2 %v479_v16  ;;  %v239_v21 = vpop.permute.xlu2 %238  ;;  %v469_v57 = vld [vmem:[%s1013_s0 + $0x8] sm:$0xff] }
  0xd3   : > { %276 = vst [vmem:[#allocation2 + $0x50] sm:$0x3f] %v273_v18  ;;  %572 = vmatpush.msra.mxu1 %v518_v20  ;;  %v243_v22 = vsel %vm242_vm2, %v239_v21, %v241_v61  ;;  %v478_v35 = vld [vmem:[#allocation2 + $0x30] sm:$0xff] }
  0xd4   : > { %446 = vst [vmem:[#allocation2 + $0x160] sm:$0x3f] %v443_v19  ;;  %600 = vmatpush.msra.mxu2 %v477_v17 }
  0xd5   : > { %246 = vst [vmem:[#allocation2 + $0x20] sm:$0x3f] %v243_v22 }
  0xd9   : > { %v411_v23 = vpop.permute.xlu0 %410  ;;  %v259_v24 = vpop.permute.xlu1 %258 }
  0xda   : > { %417 = vst.msk [vmem:[#allocation2 + $0x138] sm:$0x3f] %vm224_vm0, %v411_v23  ;;  %v263_v25 = vsel %vm262_vm3, %v259_v24, %v261_v63  ;;  %v482_v26 = vld [vmem:[#allocation2 + $0x50] sm:$0xff]  ;;  %v229_v29 = vpop.permute.xlu2 %228 }
  0xdb   : > { %266 = vst [vmem:[#allocation2 + $0x40] sm:$0x3f] %v263_v25  ;;  %551 = vmatpush.msra.mxu0 %v482_v26  ;;  %v516_v27 = vld [vmem:[#allocation2 + $0x160] sm:$0xff] }
  0xdc   : > { %573 = vmatpush.msra.mxu1 %v516_v27  ;;  %v476_v36 = vld [vmem:[#allocation2 + $0x20] sm:$0xff] }
  0xde   : > { %574 = vmatpush.msra.mxu1 %v514_v28 }
  0xe1   : > { %v231_v30 = vpop.permute.xlu0 %230  ;;  %v975_v31 = vpop.permute.xlu1 %400  ;;  %v511_v32 = vld [vmem:[#allocation2 + $0x138] sm:$0xff] }
  0xe2   : > { %237 = vst.msk [vmem:[#allocation2 + $0x18] sm:$0x3f] %vm224_vm0, %v231_v30  ;;  %v233_v33 = vsel %vm232_vm4, %v229_v29, %v231_v30  ;;  %622 = vmatpush.msra.mxu3 %v511_v32  ;;  %v480_v34 = vld [vmem:[#allocation2 + $0x40] sm:$0xff]  ;;  %v379_v47 = vpop.permute.xlu2 %378 }
  0xe3   : > { %236 = vst [vmem:[#allocation2 + $0x10] sm:$0x3f] %v233_v33  ;;  %552 = vmatpush.msra.mxu0 %v480_v34 }
  0xe4   : > { %407 = vst.msk [vmem:[#allocation2 + $0x128] sm:$0x3f] %vm224_vm0, %v975_v31 }
  0xe5   : > { %553 = vmatpush.msra.mxu0 %v478_v35 }
  0xe7   : > { %554 = vmatpush.msra.mxu0 %v476_v36 }
  0xe9   : > { %v419_v37 = vpop.permute.xlu0 %418  ;;  %v391_v38 = vpop.permute.xlu1 %390  ;;  %v475_v39 = vld [vmem:[#allocation2 + $0x18] sm:$0xff] }
  0xea   : > { %v423_v42 = vsel %vm422_vm5, %v419_v37, %v963_v55  ;;  %397 = vst.msk [vmem:[#allocation2 + $0x118] sm:$0x3f] %vm224_vm0, %v391_v38  ;;  %601 = vmatpush.msra.mxu2 %v475_v39  ;;  %v474_v43 = vld [vmem:[#allocation2 + $0x10] sm:$0xff] }
  0xeb   : > { %426 = vst [vmem:[#allocation2 + $0x140] sm:$0x3f] %v423_v42  ;;  %555 = vmatpush.msra.mxu0 %v474_v43  ;;  %v509_v46 = vld [vmem:[#allocation2 + $0x128] sm:$0xff] }
  0xec   : > { %623 = vmatpush.msra.mxu3 %v509_v46  ;;  %602 = vmatpush.msra.mxu2 %v473_v40 }
  0xed   : > { %603 = vmatmul.f32.vlgmr.msra.gmra.mxu2 %v468_v44  ;;  %556 = vmatpush.msra.mxu0 %v472_v45 }
  0xee   : > { %557 = vmatmul.f32.vlgmr.msra.gmra.mxu0 %v468_v44 }
  0xf1   : > { %v409_v50 = vpop.permute.xlu0 %408  ;;  %v381_v51 = vpop.permute.xlu1 %380  ;;  %v507_v52 = vld [vmem:[#allocation2 + $0x118] sm:$0xff] }
  0xf2   : > { %v413_v53 = vsel %vm412_vm6, %v409_v50, %v411_v23  ;;  %387 = vst.msk [vmem:[#allocation2 + $0x108] sm:$0x3f] %vm224_vm0, %v381_v51  ;;  %v383_v54 = vsel %vm382_vm7, %v379_v47, %v381_v51  ;;  %v512_v55 = vld [vmem:[#allocation2 + $0x140] sm:$0xff]  ;;  %624 = vmatpush.msra.mxu3 %v507_v52 }
  0xf3   : > { %416 = vst [vmem:[#allocation2 + $0x130] sm:$0x3f] %v413_v53  ;;  %575 = vmatpush.msra.mxu1 %v512_v55 }
  0xf4   : > { %386 = vst [vmem:[#allocation2 + $0x100] sm:$0x3f] %v383_v54 }
  0xf5   : > { %606 = vmatmul.f32.gmra.mxu2 %v470_v56 }
  0xf6   : > { %560 = vmatmul.f32.gmra.mxu0 %v470_v56 }
  0xf9   : > { %v399_v58 = vpop.permute.xlu0 %398  ;;  %v389_v59 = vpop.permute.xlu1 %388  ;;  %v505_v60 = vld [vmem:[#allocation2 + $0x108] sm:$0xff] }
  0xfa   : > { %v403_v61 = vsel %vm402_vm8, %v399_v58, %v975_v31  ;;  %v393_v62 = vsel %vm392_vm9, %v389_v59, %v391_v38  ;;  %v510_v63 = vld [vmem:[#allocation2 + $0x130] sm:$0xff]  ;;  %625 = vmatpush.msra.mxu3 %v505_v60 }
  0xfb   : > { %406 = vst [vmem:[#allocation2 + $0x120] sm:$0x3f] %v403_v61  ;;  %576 = vmatpush.msra.mxu1 %v510_v63  ;;  %703 = vmatmul.msk.f32.vlgmr.msra.gmra.mxu3 %vm534_vm10, %v469_v57  ;;  %v504_v3 = vld [vmem:[#allocation2 + $0x100] sm:$0xff] }
  0xfc   : > { %396 = vst [vmem:[#allocation2 + $0x110] sm:$0x3f] %v393_v62 }
 0x102   : > { %v508_v1 = vld [vmem:[#allocation2 + $0x120] sm:$0xff] }
 0x103   : > { %577 = vmatpush.msra.mxu1 %v508_v1  ;;  %704 = vmatmul.msk.f32.gmra.mxu3 %vm534_vm10, %v471_v0  ;;  %v506_v2 = vld [vmem:[#allocation2 + $0x110] sm:$0xff] }
 0x105   : > { %578 = vmatpush.msra.mxu1 %v506_v2 }
 0x107   : > { %579 = vmatpush.msra.mxu1 %v504_v3 }
 0x108   : > { %701 = vmatmul.msk.f32.vlgmr.msra.gmra.mxu1 %vm534_vm10, %v469_v57 }
 0x110   : > { %702 = vmatmul.msk.f32.gmra.mxu1 %vm534_vm10, %v471_v0 }
 0x121   : > { %v527_v5 = vpop.permute.xlu0 %526 }
 0x123   : > { %v532_v11 = vpop.permute.xlu1 %531 }
 0x16b   : > { %v558_v7 = vpop.f32.mrf.mxu0 }
 0x16c   : > { %v559_v12 = vadd.f32 %v558_v7, %v527_v5 }
 0x170   : > { %v604_v4 = vpop.f32.mrf.mxu2 }
 0x171   : > { %v605_v6 = vadd.f32 %v604_v4, %v527_v5 }
 0x173   : > { %v561_v17 = vpop.f32.mrf.mxu0 }
 0x174   : > { %v562_v19 = vadd.f32 %v561_v17, %v532_v11 }
 0x178   : > { %v607_v10 = vpop.f32.mrf.mxu2 }
 0x179   : > { %v608_v13 = vadd.f32 %v607_v10, %v532_v11 }
 0x17e   : > { %v627_v8 = vpop.f32.mrf.mxu3 }
 0x17f   : > { %v628_v9 = vadd.f32 %v627_v8, %v605_v6 }
 0x181   : > { %634 = vst [vmem:[%s170_s5 + $0x8] sm:$0xff] %v628_v9 }
 0x185   : > { %v581_v14 = vpop.f32.mrf.mxu1 }
 0x186   : > { %v582_v15 = vadd.f32 %v581_v14, %v559_v12  ;;  %v630_v16 = vpop.f32.mrf.mxu3 }
 0x187   : > { %v631_v18 = vadd.f32 %v630_v16, %v608_v13 }
 0x188   : > { %633 = vst [vmem:[%s170_s5] sm:$0xff] %v582_v15 }
 0x189   : > { %636 = vst [vmem:[%s170_s5 + $0x18] sm:$0xff] %v631_v18 }
 0x18d   : > { %v584_v20 = vpop.f32.mrf.mxu1 }
 0x18e   : > { %v585_v21 = vadd.f32 %v584_v20, %v562_v19 }
 0x190   : > { %635 = vst [vmem:[%s170_s5 + $0x10] sm:$0xff] %v585_v21 }
 0x191 PF: > { %s13_s12 = sadd.s32 1, %s751_s12  }
 0x192   : > { %p10_p4 = scmp.ge.s32.totalorder %s13_s12, 4  }
 0x194   :  { %12 = sbr.rel (!%p10_p4) target bundleno = 1 (0x1), region = 62 }

</bundles_post_ra>
